<compile_context>
chip_gen: v5e
topology: v5e:2x2
jax: 0.10.0
libtpu: 0.0.40
codegen_flags: <defaults>
</compile_context>

<pallas_src>
import jax
import jax.numpy as jnp
from jax.experimental import pallas as pl
from jax.experimental.pallas import tpu as pltpu


def _round_up(x, m):
    return ((x + m - 1) // m) * m


def _chip_caps():
    """Returns (vmem_capacity_bytes, is_pre_v6) with safe fallbacks."""
    kind = ""
    try:
        kind = jax.devices()[0].device_kind.lower()
    except Exception:
        pass
    try:
        vmem_cap = int(pltpu.get_tpu_info().vmem_capacity_bytes)
    except Exception:
        vmem_cap = (64 << 20) if "v7" in kind else (128 << 20)
    pre_v6 = any(t in kind for t in ("v2", "v3", "v4", "v5"))
    return vmem_cap, pre_v6


def _ffn_kernel(x_ref, w1_ref, b1_ref, w2_ref, b2_ref, o_ref, acc_ref):
    """One (tm, dim_p) token tile x one hidden tile (reduction axis)."""
    h_idx = pl.program_id(1)

    @pl.when(h_idx == 0)
    def _init():
        acc_ref[...] = jnp.zeros_like(acc_ref)

    th = w2_ref.shape[0]
    x = x_ref[...]  # (tm, dim_p), native dtype feeds the MXU directly.

    # Fused first linear: the w1 block holds [value | gate] columns for this
    # hidden tile, so a single MXU push produces both halves.
    hv = jnp.dot(x, w1_ref[...], preferred_element_type=jnp.float32)
    hv = hv + b1_ref[...].astype(jnp.float32)
    val, gates = hv[:, :th], hv[:, th:]  # th is a 128-multiple: clean slice.

    # GEGLU with exact (erf) GELU, matching torch F.gelu's default.
    inv_sqrt2 = jnp.float32(0.7071067811865476)
    u = val * (0.5 * gates * (1.0 + jax.lax.erf(gates * inv_sqrt2)))

    # Second linear: accumulate over hidden tiles into the resident f32 scratch.
    acc_ref[...] += jnp.dot(u.astype(w2_ref.dtype), w2_ref[...],
                            preferred_element_type=jnp.float32)

    @pl.when(h_idx == pl.num_programs(1) - 1)
    def _finalize():
        out = acc_ref[...] + b2_ref[...].astype(jnp.float32)
        o_ref[...] = out.astype(o_ref.dtype)


def feed_forward_pallas(x, w1, b1, w2, b2, *, tm=512, th=512, compute_dtype=None):
    """FeedForward: (x @ w1 + b1) -> GEGLU -> (@ w2 + b2).

    x: (B, N, dim). Weights follow the x @ W + b convention (W transposed vs
    torch nn.Linear.weight):
      w1: (dim, 2*hidden), b1: (2*hidden,), w2: (hidden, dim), b2: (dim,)

    compute_dtype: optionally cast activations/weights (e.g. jnp.bfloat16) for
    full-rate MXU throughput on v6e/v7x; accumulation / GEGLU stay f32.
    """
    B, N, dim = x.shape
    hidden = w2.shape[0]
    assert w1.shape == (dim, 2 * hidden)
    assert b1.shape == (2 * hidden,) and w2.shape == (hidden, dim) and b2.shape == (dim,)
    M = B * N

    if compute_dtype is not None:
        x = x.astype(compute_dtype)
        w1 = w1.astype(compute_dtype)
        w2 = w2.astype(compute_dtype)

    out_dtype = x.dtype
    act_b = x.dtype.itemsize
    w_b = w1.dtype.itemsize

    vmem_cap, pre_v6 = _chip_caps()

    # ---- padded sizes -------------------------------------------------------
    # Lane padding: 128 always; prefer 256 on v6e/v7x (2x256^2 MXU) when the
    # extra padding is cheap (<= 1/8 more columns than 128-alignment).
    dim_p128 = _round_up(dim, 128)
    dim_p256 = _round_up(dim, 256)
    dim_p = dim_p256 if (not pre_v6 and dim_p256 <= dim_p128 * 9 // 8) else dim_p128

    # Hidden tile: keep th large and pad hidden UP to a multiple of th (zero
    # padding is exact here) instead of shrinking th to 128.
    th = max(128, min(_round_up(th, 128), _round_up(hidden, 128)))

    # Row tile: multiple of 16 for 2-byte activations (sublane packing), else 8.
    row_align = 16 if act_b == 2 else 8
    tm = min(tm, _round_up(M, row_align))
    tm = max(row_align, _round_up(tm, row_align))
    # Megacore (v7x): ensure the "parallel" M axis has at least 2 tiles.
    if _round_up(M, tm) // tm < 2 and M > row_align:
        tm = _round_up((M + 1) // 2, row_align)

    # ---- fit the per-step working set into this chip's VMEM ----------------
    def _vmem_est(tm_, th_, io_bufs):
        return (io_bufs * tm_ * dim_p * act_b                  # x tiles
                + io_bufs * tm_ * dim_p * act_b                # out tiles
                + 2 * (dim_p * 2 * th_ + th_ * dim_p) * w_b    # w1 packed + w2
                + 2 * (2 * th_ + dim_p) * w_b                  # b1 packed + b2
                + tm_ * dim_p * 4)                             # f32 accumulator

    budget = int(vmem_cap * 0.85)
    io_bufs = 2
    while _vmem_est(tm, th, io_bufs) > budget:
        if io_bufs == 2:
            io_bufs = 1          # x/out only change on the outer (M) axis.
        elif th > 256:
            th //= 2
        elif tm > 2 * row_align:
            tm = max(row_align, _round_up(tm // 2, row_align))
        elif th > 128:
            th //= 2
        else:
            break

    hid_p = _round_up(hidden, th)
    m_p = _round_up(M, tm)
    grid_m, grid_h = m_p // tm, hid_p // th
    nt = grid_h

    # ---- pad & pack parameters ---------------------------------------------
    def pad2(a, rows, cols):
        return jnp.pad(a, ((0, rows - a.shape[0]), (0, cols - a.shape[1])))

    x2d = pad2(x.reshape(M, dim), m_p, dim_p)

    # Pack w1/b1 so each hidden tile's value and gate columns are contiguous:
    # per tile t, columns [t*2*th, t*2*th + th) are "value", the next th "gate".
    w1v_p = pad2(w1[:, :hidden], dim_p, hid_p)
    w1g_p = pad2(w1[:, hidden:], dim_p, hid_p)
    w1_packed = jnp.stack(
        [w1v_p.reshape(dim_p, nt, th), w1g_p.reshape(dim_p, nt, th)],
        axis=2).reshape(dim_p, 2 * hid_p)
    b1v_p = pad2(b1[:hidden].reshape(1, -1), 1, hid_p)
    b1g_p = pad2(b1[hidden:].reshape(1, -1), 1, hid_p)
    b1_packed = jnp.stack(
        [b1v_p.reshape(1, nt, th), b1g_p.reshape(1, nt, th)],
        axis=2).reshape(1, 2 * hid_p)
    w2_p = pad2(w2, hid_p, dim_p)
    b2_p = pad2(b2.reshape(1, -1), 1, dim_p)

    # ---- cost estimate (real traffic: weights re-streamed per M tile) ------
    weight_bytes = (dim_p * 2 * hid_p + hid_p * dim_p + 2 * hid_p + dim_p) * w_b
    cost = pl.CostEstimate(
        flops=6 * m_p * dim_p * hid_p,            # two matmuls
        transcendentals=m_p * hid_p,              # erf per gate element
        bytes_accessed=int(2 * m_p * dim_p * act_b + grid_m * weight_bytes),
    )

    # ---- compiler params: always set the VMEM limit, clamp per chip --------
    vmem_limit = min(max(int(_vmem_est(tm, th, io_bufs) * 3 // 2), 32 << 20), budget)
    cparams = pltpu.CompilerParams(
        dimension_semantics=("parallel", "arbitrary"),
        vmem_limit_bytes=vmem_limit,
    )

    io_kwargs = {} if io_bufs == 2 else {"pipeline_mode": pl.Buffered(1)}
    in_specs = [
        pl.BlockSpec((tm, dim_p), lambda i, h: (i, 0), **io_kwargs),   # x tile
        pl.BlockSpec((dim_p, 2 * th), lambda i, h: (0, h)),            # w1 [val|gate]
        pl.BlockSpec((1, 2 * th), lambda i, h: (0, h)),                # b1 [val|gate]
        pl.BlockSpec((th, dim_p), lambda i, h: (h, 0)),                # w2 tile
        pl.BlockSpec((1, dim_p), lambda i, h: (0, 0)),                 # b2 (resident)
    ]
    out_spec = pl.BlockSpec((tm, dim_p), lambda i, h: (i, 0), **io_kwargs)

    out2d = pl.pallas_call(
        _ffn_kernel,
        out_shape=jax.ShapeDtypeStruct((m_p, dim_p), out_dtype),
        grid_spec=pltpu.PrefetchScalarGridSpec(
            num_scalar_prefetch=0,
            grid=(grid_m, grid_h),
            in_specs=in_specs,
            out_specs=out_spec,
            scratch_shapes=[pltpu.VMEM((tm, dim_p), jnp.float32)],
        ),
        compiler_params=cparams,
        cost_estimate=cost,
    )(x2d, w1_packed, b1_packed, w2_p, b2_p)

    # TODO(synk): DropPath with drop_prob > 0 in training mode (per-sample
    # Bernoulli scaling) is not implemented; drop_prob=0 / eval is identity.
    return out2d[:M, :dim].reshape(B, N, dim)


def _reference(x, w1, b1, w2, b2):
    h = jnp.einsum('bnd,dh->bnh', x, w1) + b1
    hidden = h.shape[-1] // 2
    val, gates = h[..., :hidden], h[..., hidden:]
    u = val * jax.nn.gelu(gates, approximate=False)
    return jnp.einsum('bnh,hd->bnd', u, w2) + b2


if __name__ == "__main__":
    B, N, dim, mult = 2, 8, 32, 4
    hidden = dim * mult  # 128

    key = jax.random.PRNGKey(0)
    kx, k1, kb1, k2, kb2 = jax.random.split(key, 5)

    x = jax.random.normal(kx, (B, N, dim), dtype=jnp.float32)
    # Deterministic synthetic params; shapes per nn.Linear(dim, dim*mult*2)
    # and nn.Linear(dim*mult, dim), stored as x @ W + b (W transposed vs torch).
    w1 = jax.random.normal(k1, (dim, 2 * hidden), dtype=jnp.float32) * 0.05
    b1 = jax.random.normal(kb1, (2 * hidden,), dtype=jnp.float32) * 0.05
    w2 = jax.random.normal(k2, (hidden, dim), dtype=jnp.float32) * 0.05
    b2 = jax.random.normal(kb2, (dim,), dtype=jnp.float32) * 0.05

    out = feed_forward_pallas(x, w1, b1, w2, b2)
    out = jax.block_until_ready(out)

    ref = _reference(x, w1, b1, w2, b2)
    assert out.shape == (B, N, dim)
    assert jnp.allclose(out, ref, atol=1e-4, rtol=1e-4), "mismatch vs reference"

    print("KERNEL_OK")
</pallas_src>

<mosaic_0001>
module attributes {stable_mosaic.version = 11 : i64} {
  func.func @_ffn_kernel(%arg0: i32, %arg1: i32, %arg2: memref<8x128xf32, #tpu.memory_space<vmem>>, %arg3: memref<128x256xf32, #tpu.memory_space<vmem>>, %arg4: memref<1x256xf32, #tpu.memory_space<vmem>>, %arg5: memref<128x128xf32, #tpu.memory_space<vmem>>, %arg6: memref<1x128xf32, #tpu.memory_space<vmem>>, %arg7: memref<8x128xf32, #tpu.memory_space<vmem>>, %arg8: memref<8x128xf32, #tpu.memory_space<vmem>>) attributes {dimension_semantics = [#tpu.dimension_semantics<parallel>, #tpu.dimension_semantics<arbitrary>], iteration_bounds = array<i64: 2, 1>, scalar_prefetch = 0 : i64, scratch_operands = 1 : i64, tpu.core_type = #tpu.core_type<tc>, window_params = [{transform_indices = @transform_0, window_bounds = array<i64: 8, 128>}, {transform_indices = @transform_1, window_bounds = array<i64: 128, 256>}, {transform_indices = @transform_2, window_bounds = array<i64: 1, 256>}, {transform_indices = @transform_3, window_bounds = array<i64: 128, 128>}, {pipeline_mode = #tpu.pipeline_mode<synchronous>, transform_indices = @transform_4, window_bounds = array<i64: 1, 128>}, {transform_indices = @transform_5, window_bounds = array<i64: 8, 128>}]} {
    %c0_i32 = arith.constant 0 : i32
    %0 = arith.cmpi eq, %arg1, %c0_i32 : i32
    %1 = arith.extui %0 : i1 to i32
    %c0_i32_0 = arith.constant 0 : i32
    %2 = arith.cmpi ne, %1, %c0_i32_0 : i32
    scf.if %2 {
      %cst_18 = arith.constant 0.000000e+00 : f32
      %28 = vector.broadcast %cst_18 : f32 to vector<8x128xf32>
      %c0_19 = arith.constant 0 : index
      %c0_20 = arith.constant 0 : index
      %29 = vector.load %arg8[%c0_19, %c0_20] : memref<8x128xf32, #tpu.memory_space<vmem>>, vector<8x128xf32>
      tpu.vector_store %arg8[%c0_19, %c0_20], %28 {strides = array<i32>} : memref<8x128xf32, #tpu.memory_space<vmem>>, vector<8x128xf32>,
    } else {
    }
    %c0 = arith.constant 0 : index
    %c0_1 = arith.constant 0 : index
    %3 = vector.load %arg2[%c0, %c0_1] : memref<8x128xf32, #tpu.memory_space<vmem>>, vector<8x128xf32>
    %c0_2 = arith.constant 0 : index
    %c0_3 = arith.constant 0 : index
    %4 = vector.load %arg3[%c0_2, %c0_3] : memref<128x256xf32, #tpu.memory_space<vmem>>, vector<128x256xf32>
    %cst = arith.constant dense<0.000000e+00> : vector<8x256xf32>
    %5 = tpu.matmul %3, %4, %cst {dimension_numbers = #tpu.dot_dimension_numbers<[1], [0], [0], [1], [0, 0, 1, 1], [], []>} : vector<8x128xf32>, vector<128x256xf32>, vector<8x256xf32> -> vector<8x256xf32>
    %c0_4 = arith.constant 0 : index
    %c0_5 = arith.constant 0 : index
    %6 = vector.load %arg4[%c0_4, %c0_5] : memref<1x256xf32, #tpu.memory_space<vmem>>, vector<1x256xf32>
    %7 = vector.broadcast %6 : vector<1x256xf32> to vector<8x256xf32>
    %8 = arith.addf %5, %7 : vector<8x256xf32>
    %9 = vector.extract_strided_slice %8 {offsets = [0, 0], sizes = [8, 128], strides = [1, 1]} : vector<8x256xf32> to vector<8x128xf32>
    %10 = vector.extract_strided_slice %8 {offsets = [0, 128], sizes = [8, 128], strides = [1, 1]} : vector<8x256xf32> to vector<8x128xf32>
    %cst_6 = arith.constant 5.000000e-01 : f32
    %11 = vector.broadcast %cst_6 : f32 to vector<8x128xf32>
    %12 = arith.mulf %11, %10 : vector<8x128xf32>
    %cst_7 = arith.constant 0.707106769 : f32
    %13 = vector.broadcast %cst_7 : f32 to vector<8x128xf32>
    %14 = arith.mulf %10, %13 : vector<8x128xf32>
    %15 = math.erf %14 : vector<8x128xf32>
    %cst_8 = arith.constant 1.000000e+00 : f32
    %16 = vector.broadcast %cst_8 : f32 to vector<8x128xf32>
    %17 = arith.addf %16, %15 : vector<8x128xf32>
    %18 = arith.mulf %12, %17 : vector<8x128xf32>
    %19 = arith.mulf %9, %18 : vector<8x128xf32>
    %c0_9 = arith.constant 0 : index
    %c0_10 = arith.constant 0 : index
    %20 = vector.load %arg8[%c0_9, %c0_10] : memref<8x128xf32, #tpu.memory_space<vmem>>, vector<8x128xf32>
    %c0_11 = arith.constant 0 : index
    %c0_12 = arith.constant 0 : index
    %21 = vector.load %arg5[%c0_11, %c0_12] : memref<128x128xf32, #tpu.memory_space<vmem>>, vector<128x128xf32>
    %cst_13 = arith.constant dense<0.000000e+00> : vector<8x128xf32>
    %22 = tpu.matmul %19, %21, %cst_13 {dimension_numbers = #tpu.dot_dimension_numbers<[1], [0], [0], [1], [0, 0, 1, 1], [], []>} : vector<8x128xf32>, vector<128x128xf32>, vector<8x128xf32> -> vector<8x128xf32>
    %23 = arith.addf %20, %22 : vector<8x128xf32>
    %c0_14 = arith.constant 0 : index
    %c0_15 = arith.constant 0 : index
    %24 = vector.load %arg8[%c0_14, %c0_15] : memref<8x128xf32, #tpu.memory_space<vmem>>, vector<8x128xf32>
    tpu.vector_store %arg8[%c0_14, %c0_15], %23 {strides = array<i32>} : memref<8x128xf32, #tpu.memory_space<vmem>>, vector<8x128xf32>,
    %c0_i32_16 = arith.constant 0 : i32
    %25 = arith.cmpi eq, %arg1, %c0_i32_16 : i32
    %26 = arith.extui %25 : i1 to i32
    %c0_i32_17 = arith.constant 0 : i32
    %27 = arith.cmpi ne, %26, %c0_i32_17 : i32
    scf.if %27 {
      %c0_18 = arith.constant 0 : index
      %c0_19 = arith.constant 0 : index
      %28 = vector.load %arg8[%c0_18, %c0_19] : memref<8x128xf32, #tpu.memory_space<vmem>>, vector<8x128xf32>
      %c0_20 = arith.constant 0 : index
      %c0_21 = arith.constant 0 : index
      %29 = vector.load %arg6[%c0_20, %c0_21] : memref<1x128xf32, #tpu.memory_space<vmem>>, vector<1x128xf32>
      %30 = vector.broadcast %29 : vector<1x128xf32> to vector<8x128xf32>
      %31 = arith.addf %28, %30 : vector<8x128xf32>
      %c0_22 = arith.constant 0 : index
      %c0_23 = arith.constant 0 : index
      %32 = vector.load %arg7[%c0_22, %c0_23] : memref<8x128xf32, #tpu.memory_space<vmem>>, vector<8x128xf32>
      tpu.vector_store %arg7[%c0_22, %c0_23], %31 {strides = array<i32>} : memref<8x128xf32, #tpu.memory_space<vmem>>, vector<8x128xf32>,
    } else {
    }
    return
  }
  func.func @transform_0(%arg0: i32, %arg1: i32) -> (i32, i32) {
    %c0_i32 = arith.constant 0 : i32
    %c0_i32_0 = arith.constant 0 : i32
    return %arg0, %c0_i32 : i32, i32
  }
  func.func @transform_1(%arg0: i32, %arg1: i32) -> (i32, i32) {
    %c0_i32 = arith.constant 0 : i32
    %c0_i32_0 = arith.constant 0 : i32
    return %c0_i32, %arg1 : i32, i32
  }
  func.func @transform_2(%arg0: i32, %arg1: i32) -> (i32, i32) {
    %c0_i32 = arith.constant 0 : i32
    %c0_i32_0 = arith.constant 0 : i32
    return %c0_i32, %arg1 : i32, i32
  }
  func.func @transform_3(%arg0: i32, %arg1: i32) -> (i32, i32) {
    %c0_i32 = arith.constant 0 : i32
    %c0_i32_0 = arith.constant 0 : i32
    return %arg1, %c0_i32 : i32, i32
  }
  func.func @transform_4(%arg0: i32, %arg1: i32) -> (i32, i32) {
    %c0_i32 = arith.constant 0 : i32
    %c0_i32_0 = arith.constant 0 : i32
    %c0_i32_1 = arith.constant 0 : i32
    return %c0_i32, %c0_i32_0 : i32, i32
  }
  func.func @transform_5(%arg0: i32, %arg1: i32) -> (i32, i32) {
    %c0_i32 = arith.constant 0 : i32
    %c0_i32_0 = arith.constant 0 : i32
    return %arg0, %c0_i32 : i32, i32
  }
}

</mosaic_0001>

<bundles_post_ra>
// kernel: tpu_custom_call.1
= control target key start
LH: loop header
LB: loop body
LE: loop exit
PB: predicated region body
PF: predicated region fallthrough
CT: control target
= control target key end

     0   :  { %10 = vsyncpa [#allocation4], 0  ;;  %s1189_s0 = inlined_call_operand.hbm [shape: f32[16,128], index: 0, kind: input, shape index: {}]   ;;  %s1190_s1 = inlined_call_operand.hbm [shape: f32[128,256], index: 1, kind: input, shape index: {}]   ;;  %s1191_s2 = inlined_call_operand.hbm [shape: f32[1,256], index: 2, kind: input, shape index: {}]   ;;  %s1192_s3 = inlined_call_operand.hbm [shape: f32[128,128], index: 3, kind: input, shape index: {}]   ;;  %s1193_s4 = inlined_call_operand.vmem [shape: f32[1,128], index: 4, kind: input, shape index: {}]   ;;  %s1194_s5 = inlined_call_operand.hbm [shape: f32[16,128], index: 5, kind: output, shape index: {}]  }
   0x1   :  { %12 = vsyncpa [#allocation4 + $0x1], 0 }
   0x2   :  { %13 = vsyncpa [#allocation7], 0 }
   0x3   :  { %14 = vsyncpa [#allocation10], 0 }
   0x4   :  { %15 = vsyncpa [#allocation5], 0 }
   0x5   :  { %17 = vsyncpa [#allocation5 + $0x1], 0  ;;  %s1004_s18 = smov 0   ;;  %s1006_s19 = smov 0  }
   0x6   :  { %s1008_s20 = smov 0   ;;  %s1010_s21 = smov 0  }
   0x7   :  { %s1012_s22 = smov 0   ;;  %s1014_s23 = smov 0  }
   0x8 LB: > { %s635_s24 = sadd.s32 4294967295, %s965_s23   ;;  %p637_p0 = scmp.ge.s32.totalorder %s965_s23, 1  ;;  %s965_s23 = sphi %s1014_s23, %s23_s23   ;;  %s961_s22 = sphi %s1012_s22, %s1206_s22   ;;  %s957_s21 = sphi %s1010_s21, %s1205_s21   ;;  %s953_s20 = sphi %s1008_s20, %s1204_s20   ;;  %s949_s19 = sphi %s1006_s19, %s1203_s19   ;;  %s945_s18 = sphi %s1004_s18, %s1202_s18  }
   0x9   : > { %p1038_p1 = scmp.eq.s32.totalorder %s635_s24, 0  ;;  %p191_p2 = scmp.lt.s32.totalorder %s965_s23, 3 }
   0xa   : > { %s205_s28 = sshll.u32 %s1190_s1, 4  ;;  %s967_s30 = smov [#allocation6]   ;;  %s206_s28 = int_to_ptr.hbm [resolvable:$true] %s205_s28 }
   0xb   : > { %p1046_p3 = pnand %p637_p0, %p191_p2  ;;  %s207_s6 = sshll.u32 %s967_s30, 4  ;;  %s208_s6 = int_to_ptr.vmem [resolvable:$true] %s207_s6 }
   0xc   : > { %p641_p6 = scmp.ge.s32.totalorder %s965_s23, 2  ;;  %s222_s10 = sshll.u32 %s1191_s2, 4  ;;  %s223_s10 = int_to_ptr.hbm [resolvable:$true] %s222_s10 }
   0xd   : > { %p671_p4 = pneg %p1046_p3  ;;  %s968_s11 = smov 256  }
   0xe   : > { %s969_s12 = smov 16   ;;  %s970_s13 = smov [#allocation8]  }
   0xf   : > { %p1054_p5 = pnand %p671_p4, %p1038_p1  ;;  %s224_s14 = sshll.u32 %s970_s13, 4  ;;  %s225_s14 = int_to_ptr.vmem [resolvable:$true] %s224_s14 }
  0x10   : > { %s236_s17 = sshll.u32 %s1192_s3, 4  ;;  %s971_s26 = smov [#allocation9]   ;;  %s237_s17 = int_to_ptr.hbm [resolvable:$true] %s236_s17 }
  0x11   : > { %674 = dma.hbm_to_vmem [thread:$0]  (!%p1054_p5), %s206_s28, 4096, %s208_s6, [#allocation7], %s968_s11, %s968_s11, %s969_s12  }
  0x12   : > { %677 = dma.hbm_to_vmem [thread:$0]  (!%p1054_p5), %s223_s10, 32, %s225_s14, [#allocation7]  }
  0x13   : > { %s238_s27 = sshll.u32 %s971_s26, 4  ;;  %s972_s28 = smov 128   ;;  %s239_s27 = int_to_ptr.vmem [resolvable:$true] %s238_s27 }
  0x14   : > { %s973_s30 = smov 8   ;;  %s636_s6 = sadd.s32 4294967294, %s965_s23  }
  0x15   : > { %680 = dma.hbm_to_vmem [thread:$0]  (!%p1054_p5), %s237_s17, 2048, %s239_s27, [#allocation10], %s972_s28, %s972_s28, %s973_s30  }
  0x16   : > { %s35_s8 = sadd.s32 1, %s961_s22  ;;  %s42_s9 = sadd.s32 1, %s953_s20 }
  0x17   : > { %p37_p7 = scmp.ge.s32.totalorder %s35_s8, 2  ;;  %p49_p8 = scmp.ne.s32.totalorder %s953_s20, %s949_s19 }
  0x18   : > { %p50_p9 = scmp.eq.s32.totalorder %s965_s23, 0  ;;  %p55_p10 = scmp.ne.s32.totalorder %s949_s19, %s945_s18 }
  0x19   : > { %s1208_s8 = smov (%p37_p7, %s35_s8), 0  ;;  %p178_p13 = scmp.eq.s32.totalorder %s635_s24, 1 }
  0x1a   : > { %p1081_p11 = por %p50_p9, %p49_p8  ;;  %p1087_p12 = por %p1038_p1, %p55_p10 }
  0x1b   : > { %s39_s11 = ssub.s32 %s961_s22, %s1208_s8  ;;  %p184_p2 = scmp.eq.s32.totalorder %s636_s6, 1 }
  0x1c   : > { %p40_p0 = scmp.eq.s32.totalorder %s39_s11, 0  ;;  %p1095_p4 = por %p178_p13, %p49_p8 }
  0x1d   : > { %p692_p5 = scmp.lt.s32.totalorder %s965_s23, 2  ;;  %p1103_p7 = por %p184_p2, %p55_p10 }
  0x1e   : > { %s1101_s13 = scalar_select %p40_p0, %s953_s20, %s42_s9  }
  0x1f   : > { %s255_s15 = sand.u32 1, %s953_s20   ;;  %s643_s17 = sshll.u32 %s961_s22, 3 }
  0x20   : > { %s642_s16 = sshll.u32 %s255_s15, 3  ;;  %s263_s24 = scalar_lea.hbm %s1189_s0, %s643_s17 }
  0x21   : > { %s259_s28 = scalar_lea.vmem [#allocation3], %s642_s16  ;;  %s265_s6 = sshll.u32 %s263_s24, 4  ;;  %s266_s6 = int_to_ptr.hbm [resolvable:$true] %s265_s6 }
  0x22   : > { %s267_s30 = sshll.u32 %s259_s28, 4  ;;  %p682_p8 = pnand %p692_p5, %p1081_p11  ;;  %s268_s30 = int_to_ptr.vmem [resolvable:$true] %s267_s30 }
  0x23   : > { %s256_s9 = scalar_lea.sflag [#allocation4], %s255_s15  ;;  %276 = sbr.rel (%p1046_p3) target bundleno = 395 (0x18b), region = 40 }
  0x24   : > { %684 = dma.hbm_to_vmem [thread:$0]  (!%p682_p8), %s266_s6, 128, %s268_s30, %s256_s9  }
  0x25   : > { %s1117_s11 = sand.u32 (!%p1046_p3), 1, %s949_s19  }
  0x26   : > { %s645_s17 = sshll.u32 (!%p1046_p3), %s1117_s11, 3  ;;  %s279_s16 = scalar_lea.sflag (!%p1046_p3), [#allocation4], %s1117_s11 }
  0x27   : > { %s1123_s26 = scalar_lea.vmem (!%p1046_p3), [#allocation3], %s645_s17 }
  0x28   : > { %928 = dma.done.wait (%p1087_p12), %s279_s16, 128  }
  0x29   : > { %930 = vsyncadd (%p1087_p12), %s279_s16, 4294967168 }
  0x2a   : > { %932 = dma.done.wait (%p1038_p1), [#allocation7], 4128  }
  0x2b   : > { %934 = vsyncadd (%p1038_p1), [#allocation7], 4294963168 }
  0x2c   : > { %936 = dma.done.wait (%p1038_p1), [#allocation10], 2048  }
  0x2d   : > { %938 = vsyncadd (%p1038_p1), [#allocation10], 4294965248  ;;  %v365_v0 = vld [vmem:[#allocation6 + $0xf8] sm:$0xff]  ;;  %v363_v1 = vld [vmem:[#allocation6 + $0xe8] sm:$0xff]  ;;  %s652_s25 = sshll.u32 %s957_s21, 3  ;;  %s324_s24 = scalar_lea.vmem [#allocation11], %s645_s17 }
  0x2e   : > { %392 = vmatpush.msra.mxu1 %v365_v0  ;;  %v361_v2 = vld [vmem:[#allocation6 + $0xd8] sm:$0xff]  ;;  %v359_v3 = vld [vmem:[#allocation6 + $0xc8] sm:$0xff]  ;;  %v364_v4 = vld [vmem:[#allocation6 + $0xf0] sm:$0xff]  ;;  %s517_s7 = scalar_lea.hbm %s1194_s5, %s652_s25  ;;  %s519_s28 = sshll.u32 %s324_s24, 4  ;;  %s520_s28 = int_to_ptr.vmem [resolvable:$true] %s519_s28 }
  0x2f   : > { %v357_v5 = vld [vmem:[#allocation6 + $0xb8] sm:$0xff]  ;;  %372 = vmatpush.msra.mxu0 %v364_v4  ;;  %v362_v6 = vld [vmem:[#allocation6 + $0xe0] sm:$0xff]  ;;  %v360_v7 = vld [vmem:[#allocation6 + $0xd0] sm:$0xff]  ;;  %s521_s30 = sshll.u32 %s517_s7, 4  ;;  %s507_s6 = scalar_lea.sflag [#allocation5], %s1117_s11  ;;  %s522_s30 = int_to_ptr.hbm [resolvable:$true] %s521_s30 }
  0x30   : > { %393 = vmatpush.msra.mxu1 %v363_v1  ;;  %v355_v8 = vld [vmem:[#allocation6 + $0xa8] sm:$0xff]  ;;  %v358_v9 = vld [vmem:[#allocation6 + $0xc0] sm:$0xff]  ;;  %v353_v10 = vld [vmem:[#allocation6 + $0x98] sm:$0xff]  ;;  %s889_s21 = sshra.s32 %s522_s30, 4  ;;  %s895_s25 = scalar_lea.hbm %s1194_s5, 16  ;;  %s890_s21 = int_to_ptr.hbm [resolvable:$true] %s889_s21 }
  0x31   : > { %373 = vmatpush.msra.mxu0 %v362_v6  ;;  %v356_v11 = vld [vmem:[#allocation6 + $0xb0] sm:$0xff]  ;;  %v351_v12 = vld [vmem:[#allocation6 + $0x88] sm:$0xff]  ;;  %v354_v13 = vld [vmem:[#allocation6 + $0xa0] sm:$0xff]  ;;  %s891_s9 = scalar_lea.hbm %s890_s21, 8  ;;  %p896_p10 = scmp.lt.s32.totalorder %s890_s21, %s1194_s5 }
  0x32   : > { %394 = vmatpush.msra.mxu1 %v361_v2  ;;  %v349_v14 = vld [vmem:[#allocation6 + $0x78] sm:$0xff]  ;;  %v352_v15 = vld [vmem:[#allocation6 + $0x90] sm:$0xff]  ;;  %v347_v16 = vld [vmem:[#allocation6 + $0x68] sm:$0xff]  ;;  %p892_p1 = scmp.ne.s32.totalorder %s890_s21, %s891_s9  ;;  %p897_p11 = scmp.lt.s32.totalorder %s895_s25, %s891_s9 }
  0x33   : > { %374 = vmatpush.msra.mxu0 %v360_v7  ;;  %v350_v17 = vld [vmem:[#allocation6 + $0x80] sm:$0xff]  ;;  %v345_v18 = vld [vmem:[#allocation6 + $0x58] sm:$0xff]  ;;  %v348_v19 = vld [vmem:[#allocation6 + $0x70] sm:$0xff] }
  0x34   : > { %395 = vmatpush.msra.mxu1 %v359_v3  ;;  %v343_v20 = vld [vmem:[#allocation6 + $0x48] sm:$0xff]  ;;  %v346_v21 = vld [vmem:[#allocation6 + $0x60] sm:$0xff]  ;;  %v341_v22 = vld [vmem:[#allocation6 + $0x38] sm:$0xff]  ;;  %p893_p3 = pnand %p892_p1, %p1095_p4  ;;  %p898_p12 = por %p897_p11, %p896_p10 }
  0x35   : > { %375 = vmatpush.msra.mxu0 %v358_v9  ;;  %v344_v23 = vld [vmem:[#allocation6 + $0x50] sm:$0xff]  ;;  %v339_v24 = vld [vmem:[#allocation6 + $0x28] sm:$0xff]  ;;  %v342_v25 = vld [vmem:[#allocation6 + $0x40] sm:$0xff] }
  0x36   : > { %396 = vmatpush.msra.mxu1 %v357_v5  ;;  %v337_v26 = vld [vmem:[#allocation6 + $0x18] sm:$0xff]  ;;  %v340_v27 = vld [vmem:[#allocation6 + $0x30] sm:$0xff]  ;;  %v335_v28 = vld [vmem:[#allocation6 + $0x8] sm:$0xff]  ;;  %p894_p9 = pneg %p893_p3 }
  0x37   : > { %376 = vmatpush.msra.mxu0 %v356_v11  ;;  %v333_v29 = vld [vmem:[%s1123_s26] sm:$0xff]  ;;  %v338_v30 = vld [vmem:[#allocation6 + $0x20] sm:$0xff] }
  0x38   : > { %397 = vmatpush.msra.mxu1 %v355_v8  ;;  %v336_v31 = vld [vmem:[#allocation6 + $0x10] sm:$0xff]  ;;  %v334_v32 = vld [vmem:[#allocation6] sm:$0xff]  ;;  %p899_p13 = pnand %p898_p12, %p894_p9 }
  0x39   : > { %377 = vmatpush.msra.mxu0 %v354_v13  ;;  %v473_v33 = vld [vmem:[#allocation9 + $0x78] sm:$0xff]  ;;  %v472_v35 = vld [vmem:[#allocation9 + $0x70] sm:$0xff]  ;;  %v471_v36 = vld [vmem:[#allocation9 + $0x68] sm:$0xff] }
  0x3a   : > { %398 = vmatpush.msra.mxu1 %v353_v10  ;;  %474 = vmatpush.msra.mxu2 %v473_v33  ;;  %v1138_v34 = vld [vmem:[#allocation8] sm:$0x3]  ;;  %v470_v38 = vld [vmem:[#allocation9 + $0x60] sm:$0xff]  ;;  %v468_v41 = vld [vmem:[#allocation9 + $0x50] sm:$0xff] }
  0x3b   : > { %378 = vmatpush.msra.mxu0 %v352_v15  ;;  %v369_v37 = vperm.slane %v1138_v34, 1  ;;  %v469_v39 = vld [vmem:[#allocation9 + $0x58] sm:$0xff]  ;;  %v467_v43 = vld [vmem:[#allocation9 + $0x48] sm:$0xff]  ;;  %v466_v45 = vld [vmem:[#allocation9 + $0x40] sm:$0xff] }
  0x3c   : > { %399 = vmatpush.msra.mxu1 %v351_v12  ;;  %475 = vmatpush.msra.mxu2 %v472_v35  ;;  %v465_v47 = vld [vmem:[#allocation9 + $0x38] sm:$0xff]  ;;  %v464_v49 = vld [vmem:[#allocation9 + $0x30] sm:$0xff]  ;;  %v463_v52 = vld [vmem:[#allocation9 + $0x28] sm:$0xff] }
  0x3d   : > { %379 = vmatpush.msra.mxu0 %v350_v17  ;;  %v462_v55 = vld [vmem:[#allocation9 + $0x20] sm:$0xff]  ;;  %v461_v58 = vld [vmem:[#allocation9 + $0x18] sm:$0xff]  ;;  %v460_v61 = vld [vmem:[#allocation9 + $0x10] sm:$0xff] }
  0x3e   : > { %400 = vmatpush.msra.mxu1 %v349_v14  ;;  %476 = vmatpush.msra.mxu2 %v471_v36  ;;  %v459_v63 = vld [vmem:[#allocation9 + $0x8] sm:$0xff]  ;;  %v458_v2 = vld [vmem:[#allocation9] sm:$0xff] }
  0x3f   : > { %380 = vmatpush.msra.mxu0 %v348_v19 }
  0x40   : > { %401 = vmatpush.msra.mxu1 %v347_v16  ;;  %477 = vmatpush.msra.mxu2 %v470_v38 }
  0x41   : > { %381 = vmatpush.msra.mxu0 %v346_v21 }
  0x42   : > { %402 = vmatpush.msra.mxu1 %v345_v18  ;;  %478 = vmatpush.msra.mxu2 %v469_v39 }
  0x43   : > { %382 = vmatpush.msra.mxu0 %v344_v23  ;;  %v368_v23 = vperm.slane %v1138_v34, 0 }
  0x44   : > { %403 = vmatpush.msra.mxu1 %v343_v20  ;;  %479 = vmatpush.msra.mxu2 %v468_v41 }
  0x45   : > { %383 = vmatpush.msra.mxu0 %v342_v25 }
  0x46   : > { %404 = vmatpush.msra.mxu1 %v341_v22  ;;  %480 = vmatpush.msra.mxu2 %v467_v43 }
  0x47   : > { %384 = vmatpush.msra.mxu0 %v340_v27 }
  0x48   : > { %405 = vmatpush.msra.mxu1 %v339_v24  ;;  %481 = vmatpush.msra.mxu2 %v466_v45 }
  0x49   : > { %385 = vmatpush.msra.mxu0 %v338_v30 }
  0x4a   : > { %406 = vmatpush.msra.mxu1 %v337_v26  ;;  %482 = vmatpush.msra.mxu2 %v465_v47 }
  0x4b   : > { %386 = vmatpush.msra.mxu0 %v336_v31 }
  0x4c   : > { %407 = vmatpush.msra.mxu1 %v335_v28  ;;  %483 = vmatpush.msra.mxu2 %v464_v49 }
  0x4d   : > { %408 = vmatmul.f32.vlgmr.msra.gmra.mxu1 %v333_v29  ;;  %387 = vmatpush.msra.mxu0 %v334_v32  ;;  %v752_v32 = vld [vmem:[%s1193_s4] ss:$0 sm:$0xff] }
  0x4e   : > { %388 = vmatmul.f32.vlgmr.msra.gmra.mxu0 %v333_v29  ;;  %484 = vmatpush.msra.mxu2 %v463_v52 }
  0x50   : > { %485 = vmatpush.msra.mxu2 %v462_v55 }
  0x52   : > { %486 = vmatpush.msra.mxu2 %v461_v58 }
  0x54   : > { %487 = vmatpush.msra.mxu2 %v460_v61 }
  0x56   : > { %488 = vmatpush.msra.mxu2 %v459_v63 }
  0x58   : > { %489 = vmatpush.msra.mxu2 %v458_v2 }
  0xca   : > { %v409_v40 = vpop.f32.mrf.mxu1 }
  0xcb   : > { %v1141_v42 = vadd.f32 %v409_v40, %v369_v37  ;;  %v389_v25 = vpop.f32.mrf.mxu0 }
  0xcc   : > { %v390_v28 = vadd.f32 %v389_v25, %v368_v23 }
  0xcd   : > { %v413_v44 = vmul.f32 0.70710677, %v1141_v42  ;;  %v412_v27 = vmul.f32 0.5, %v1141_v42 }
  0xcf   : > { %v414_v46 = vmul.f32 %v413_v44, %v413_v44 }
  0xd1   : > { %v415_v48 = vmin.f32 %v414_v46, 16.0 }
  0xd3   : > { %v416_v50 = vmul.f32 2.1237322e-06, %v415_v48  ;;  %v427_v51 = vmul.f32 3.8918573e-05, %v415_v48 }
  0xd5   : > { %v417_v53 = vadd.f32 0.00028619796, %v416_v50  ;;  %v428_v54 = vadd.f32 0.001143296, %v427_v51 }
  0xd7   : > { %v418_v56 = vmul.f32 %v417_v53, %v415_v48  ;;  %v429_v57 = vmul.f32 %v428_v54, %v415_v48 }
  0xd9   : > { %v430_v59 = vadd.f32 0.014752088, %v429_v57  ;;  %v419_v60 = vadd.f32 0.0036580483, %v418_v56 }
  0xdb   : > { %v431_v62 = vmul.f32 %v430_v59, %v415_v48  ;;  %v420_v1 = vmul.f32 %v419_v60, %v415_v48 }
  0xdd   : > { %v432_v0 = vadd.f32 0.112945676, %v431_v62  ;;  %v421_v5 = vadd.f32 0.05243302, %v420_v1 }
  0xdf   : > { %v433_v3 = vmul.f32 %v432_v0, %v415_v48  ;;  %v422_v8 = vmul.f32 %v421_v5, %v415_v48 }
  0xe1   : > { %v434_v4 = vadd.f32 0.4994258, %v433_v3  ;;  %v423_v9 = vadd.f32 0.18741608, %v422_v8 }
  0xe3   : > { %v435_v6 = vmul.f32 %v434_v4, %v415_v48  ;;  %v424_v11 = vmul.f32 %v423_v9, %v415_v48 }
  0xe5   : > { %v436_v7 = vadd.f32 1.0, %v435_v6  ;;  %v425_v15 = vadd.f32 1.1283791, %v424_v11 }
  0xe7   : > { %753 = vrcp.f32 %v436_v7  ;;  %v448_v14 = vand.u32 2147483648, %v436_v7  ;;  %v446_v17 = vand.u32 2147483647, %v436_v7  ;;  %vm442_vm1 = vweird.f32 %v436_v7 }
  0xe8   : > { %v426_v20 = vmul.f32 %v425_v15, %v413_v44 }
  0xe9   : > { %v449_v19 = vor.u32 1.1754944e-38, %v448_v14  ;;  %vm447_vm3 = vcmp.eq.f32.partialorder %v446_v17, 8.507059e+37 }
  0xed   : > { %v754_v10 = vpop.eup %753 }
  0xee   : > { %v438_v12 = vmul.f32 %v754_v10, %v436_v7  ;;  %vm443_vm0 = vweird.f32 %v754_v10 }
  0xef   : > { %vm444_vm2 = vmor %vm442_vm1, %vm443_vm0 }
  0xf0   : > { %v439_v13 = vsub.f32 1.0, %v438_v12 }
  0xf2   : > { %v440_v16 = vmul.f32 %v754_v10, %v439_v13 }
  0xf4   : > { %v441_v18 = vadd.f32 %v754_v10, %v440_v16 }
  0xf6   : > { %v445_v21 = vsel %vm444_vm2, %v754_v10, %v441_v18 }
  0xf7   : > { %v450_v22 = vsel %vm447_vm3, %v449_v19, %v445_v21 }
  0xf8   : > { %v451_v24 = vmul.f32 %v450_v22, %v426_v20 }
  0xfa   : > { %v650_v26 = vclamps-f32 %v451_v24, 1.0 }
  0xfc   : > { %v454_v29 = vadd.f32 1.0, %v650_v26 }
  0xfe   : > { %v455_v30 = vmul.f32 %v454_v29, %v412_v27 }
 0x100   : > { %v456_v31 = vmul.f32 %v455_v30, %v390_v28 }
 0x102   : > { %490 = vmatmul.f32.vlgmr.msra.gmra.mxu2 %v456_v31 }
 0x185   : > { %v491_v33 = vpop.f32.mrf.mxu2 }
 0x186   : > { %v504_v34 = vadd.f32 %v752_v32, %v491_v33 }
 0x188   : > { %505 = vst [vmem:[%s324_s24] sm:$0xff] %v504_v34 }
 0x189   : > { %902 = shalt.err (!%p899_p13)
}
 0x18a   : > { %669 = dma.vmem_to_hbm [thread:$0]  (%p1095_p4), %s520_s28, 128, %s522_s30, %s507_s6  }
 0x18b PF: > { %s533_s11 = sand.u32 1, %s945_s18   ;;  %p686_p0 = pnand %p641_p6, %p1103_p7 }
 0x18c   : > { %s534_s10 = scalar_lea.sflag [#allocation5], %s533_s11 }
 0x18d   : > { %p687_p2 = pneg %p686_p0 }
 0x18f   : > { %940 = dma.done.wait (%p687_p2), %s534_s10, 128  }
 0x190   : > { %942 = vsyncadd (%p687_p2), %s534_s10, 4294967168  ;;  %s23_s23 = sadd.s32 1, %s965_s23   ;;  %s1202_s18 = smov %s949_s19 }
 0x191   : > { %p20_p5 = scmp.ge.s32.totalorder %s23_s23, 4   ;;  %s1203_s19 = smov %s953_s20 }
 0x192   : > { %s1204_s20 = smov %s1101_s13  ;;  %s1205_s21 = smov %s961_s22 }
 0x193   : > { %s1206_s22 = smov %s1208_s8  ;;  %22 = sbr.rel (!%p20_p5) target bundleno = 8 (0x8), region = 108 }
 0x198   :  { %540 = vsyncpa [#allocation4], 1 }
 0x199   :  { %542 = vsyncpa [#allocation4 + $0x1], 1 }
 0x19a   :  { %543 = vsyncpa [#allocation7], 1 }
 0x19b   :  { %544 = vsyncpa [#allocation10], 1 }
 0x19c   :  { %545 = vsyncpa [#allocation5], 1 }
 0x19d   :  { %547 = vsyncpa [#allocation5 + $0x1], 1 }

</bundles_post_ra>
